<compile_context>
chip_gen: v5e
topology: v5e:2x2
jax: 0.10.0
libtpu: 0.0.40
codegen_flags: <defaults>
</compile_context>

<pallas_src>
import functools
import math

import jax
import jax.numpy as jnp
import numpy as np
from jax.experimental import pallas as pl
from jax.experimental.pallas import tpu as pltpu

_LANES = 128        # TPU lane width
_SUBLANES = 8       # fp32 sublane granularity: batch tiles are multiples of 8 (or == B)
_NEG_INF = -1e30    # key-padding mask value (exp underflows to exactly 0 under the row max)
_TEMP_BUDGET = 3 * 1024 * 1024   # budget for the per-chunk (TB, sc, E) broadcast temporaries
_MAX_S_CHUNKS = 16               # static-unroll bound for the in-kernel S chunk loop


def _round_up(x, m):
    return int(pl.cdiv(x, m) * m)


def _vmem_capacity_bytes():
    """Physical VMEM per TensorCore (64 MiB on v7x, 128 MiB on v5e/v6e); conservative fallback."""
    try:
        info = pltpu.get_tpu_info()
        for name in ("vmem_capacity_bytes", "vmem_size_bytes", "vmem_bytes"):
            v = getattr(info, name, None)
            if v:
                return int(v)
    except Exception:
        pass
    return 64 * 1024 * 1024


def attended_polarity_kernel(x_ref, mask_ref, weff_ref, wpol_ref, bpol_ref,
                             attn_ref, pol_ref, att_ref, *, s_chunk):
    """One batch tile of AttendedPolarity.

    x_ref    : (TB, S, E)  'neutral' token embeddings (full S, E extents — no padding)
    mask_ref : (TB, S)     1.0 = real token, 0.0 = padding
    weff_ref : (E, E)      (Wq @ Wk^T) / sqrt(E)   (folded; resident across grid steps)
    wpol_ref : (1, E)      polarity head weight    (resident)
    bpol_ref : (1, 1)      polarity head bias      (SMEM scalar)
    attn_ref : (TB, S)     softmax attention weights (output or VMEM scratch)
    pol_ref  : (TB, S)     raw per-token polarity    (output or VMEM scratch)
    att_ref  : (TB, 128)   attended polarity broadcast across lanes (lane-dense store)
    """
    tb, S, E = x_ref.shape
    assert S % s_chunk == 0
    n_chunks = S // s_chunk

    m = mask_ref[...]                               # (TB, S)
    weff = weff_ref[...]                            # (E, E)
    wpol3 = wpol_ref[...].reshape(1, 1, E)          # (1, 1, E)
    bpol = bpol_ref[0, 0]                           # SMEM scalar

    cnt = jnp.sum(m, axis=-1, keepdims=True)        # (TB, 1)
    # Per-row (width-1) exact divide: O(TB) work, removes the systematic attn-sum error an
    # approx reciprocal would introduce (approx only pays off for per-element reciprocals).
    inv_cnt = 1.0 / jnp.maximum(cnt, 1.0)

    # ---- pass 1 over the x tile: masked pooled sum over S (chunked to bound temporaries) ----
    pooled = None
    for j in range(n_chunks):                       # static unroll; chunk count is small
        lo, hi = j * s_chunk, (j + 1) * s_chunk
        xc = x_ref[:, lo:hi, :]                     # (TB, sc, E)
        part = jnp.sum(xc * m[:, lo:hi, None], axis=1)          # (TB, E) sublane reduce
        pooled = part if pooled is None else pooled + part

    # folded projection on the MXU: q @ Wq @ Wk^T / sqrt(E)
    qe = jnp.dot(pooled * inv_cnt, weff, preferred_element_type=jnp.float32)   # (TB, E)

    # ---- pass 2 over the x tile (fused): attention scores + polarity from the SAME loaded ----
    # chunk (one vld stream, two lane reductions); static slices avoid dynamic lane stores.
    for j in range(n_chunks):
        lo, hi = j * s_chunk, (j + 1) * s_chunk
        xc = x_ref[:, lo:hi, :]                                  # (TB, sc, E) single load
        attn_ref[:, lo:hi] = jnp.sum(qe[:, None, :] * xc, axis=-1)       # raw scores staged
        pol_ref[:, lo:hi] = jnp.sum(wpol3 * xc, axis=-1) + bpol          # raw polarity

    # ---- key-padding mask + softmax (== nn.MultiheadAttention single-head weights) ----------
    scores = jnp.where(m > 0.0, attn_ref[...], jnp.float32(_NEG_INF))
    smax = jnp.max(scores, axis=-1, keepdims=True)
    p = jnp.exp(scores - smax)
    inv_l = 1.0 / jnp.sum(p, axis=-1, keepdims=True)             # per-row exact divide
    attn = p * inv_l
    attn_ref[...] = attn

    # ---- attended polarity + NaN scrub --------------------------------------------------------
    # torch: fully-masked rows make the MHA softmax NaN and `attended[attended != attended] = 0`
    # zeroes them; replicate that (and the generic NaN scrub) explicitly.
    attended = jnp.sum(attn * pol_ref[...], axis=-1, keepdims=True)      # (TB, 1)
    valid = jnp.logical_and(cnt > 0.0, jnp.logical_not(jnp.isnan(attended)))
    attended = jnp.where(valid, attended, 0.0)
    att_ref[...] = jnp.broadcast_to(attended, (tb, _LANES))              # lane-dense slab


def _choose_batch_tile(B, S, E, budget_bytes, min_grid_steps=4):
    """Largest batch tile that (a) keeps the double-buffered streamed blocks within the VMEM
    budget, (b) leaves >= min_grid_steps grid steps when the batch allows it (v7x megacore
    sharding + DMA/compute overlap), and (c) divides B so no padded copy of x is materialized."""
    e_pad = _round_up(E, _LANES)
    row_bytes = 4 * (_round_up(S, _SUBLANES) * e_pad     # x  (lane-padded E in VMEM)
                     + 3 * _round_up(S, _LANES)          # mask + attn + pol
                     + _LANES)                           # attended slab
    vmem_cap = max(_SUBLANES,
                   (budget_bytes * 3 // 4) // (2 * row_bytes) // _SUBLANES * _SUBLANES)
    cap = vmem_cap
    if B >= min_grid_steps * _SUBLANES:
        cap = min(cap, max(_SUBLANES, (B // min_grid_steps) // _SUBLANES * _SUBLANES))
    elif B >= 2 * _SUBLANES:
        cap = min(cap, max(_SUBLANES, (B // 2) // _SUBLANES * _SUBLANES))
    t = min(cap, (B // _SUBLANES) * _SUBLANES)
    while t >= _SUBLANES:
        if B % t == 0:
            return t                    # divides B: no padding, even grid
        t -= _SUBLANES
    if B <= vmem_cap:
        return B                        # odd small batch: one unpadded step beats copying x
    return cap                          # rare fallback: wrapper zero-pads the batch


def _choose_s_chunk(S, tb, e_pad, temp_budget=_TEMP_BUDGET):
    """Largest divisor-of-S chunk whose (TB, sc, E) broadcast temporaries fit the budget."""
    def fits(sc):
        return 3 * 4 * tb * _round_up(sc, _SUBLANES) * e_pad <= temp_budget
    best_any = None
    for n in range(1, _MAX_S_CHUNKS + 1):
        if S % n:
            continue
        sc = S // n
        if fits(sc):
            if sc % _SUBLANES == 0 or sc == S:      # prefer sublane-aligned chunks
                return sc, n
            if best_any is None:
                best_any = (sc, n)
    if best_any is not None:
        return best_any
    for n in range(_MAX_S_CHUNKS, 1, -1):           # accept bigger temps within unroll bound
        if S % n == 0:
            return S // n, n
    return S, 1


def _vmem_limit_bytes(tb, S, E, s_chunk, capacity):
    """Explicit Mosaic VMEM limit: double-buffered streamed blocks + resident weights +
    chunk temporaries + headroom, capped at physical VMEM minus headroom (v7x = 64 MiB)."""
    e_pad = _round_up(E, _LANES)
    tb8 = _round_up(tb, _SUBLANES)
    block = 4 * (tb * _round_up(S, _SUBLANES) * e_pad
                 + 3 * tb8 * _round_up(S, _LANES)
                 + tb8 * _LANES)
    resident = 4 * (_round_up(E, _SUBLANES) * e_pad + _SUBLANES * e_pad)
    temps = 4 * 6 * tb * _round_up(s_chunk, _SUBLANES) * e_pad
    want = 2 * block + resident + temps + (4 << 20)
    hi = max(capacity - (8 << 20), 24 << 20)
    return int(min(max(want, 16 << 20), hi))


def attended_polarity_forward(x_neutral, mask_f, wq, wk, w_pol, b_pol, labels,
                              *, beta=1.0, batch_tile=None, s_chunk=None,
                              vmem_budget_bytes=None, return_attn_pol=True):
    """Returns (loss, attended_polarity, attn_flattened, raw_polarity)."""
    B, S, E = x_neutral.shape
    capacity = _vmem_capacity_bytes()
    if vmem_budget_bytes is None:
        # ~capacity/3: ~21 MiB on v7x (64 MiB VMEM), ~42 MiB on v5e/v6e (128 MiB VMEM).
        vmem_budget_bytes = int(min(max(capacity // 3, 16 << 20), 48 << 20))
    vmem_budget_bytes = int(min(vmem_budget_bytes, capacity // 2))

    tb = int(batch_tile) if batch_tile is not None else _choose_batch_tile(
        B, S, E, vmem_budget_bytes)
    assert tb == B or tb % _SUBLANES == 0, "batch tile must be a multiple of 8 or equal B"

    e_pad = _round_up(E, _LANES)
    if s_chunk is None:
        s_chunk, _ = _choose_s_chunk(S, tb, e_pad)
    assert S % s_chunk == 0

    # Fold Wq, Wk and the 1/sqrt(E) MHA scale into a single (E, E) matrix (only the attention
    # weights are consumed), removing the O(B*S*E^2) K-projection from the kernel entirely.
    w_eff = ((wq @ wk.T) * (1.0 / math.sqrt(E))).astype(jnp.float32)

    if B % tb == 0:
        b_pad, x_in, m_in = B, x_neutral, mask_f      # common case: NO copies of x / mask
    else:
        # TODO(synk): rare fallback — materializes a zero-padded copy of x in HBM (extra
        # read+write of a memory-bound input); prefer batch sizes with a multiple-of-8 divisor.
        b_pad = _round_up(B, tb)
        x_in = jnp.zeros((b_pad, S, E), jnp.float32).at[:B].set(x_neutral)
        m_in = jnp.zeros((b_pad, S), jnp.float32).at[:B].set(mask_f)
    grid = (b_pad // tb,)

    vmem_limit = _vmem_limit_bytes(tb, S, E, s_chunk, capacity)

    in_specs = [
        pl.BlockSpec((tb, S, E), lambda i: (i, 0, 0)),             # x tile (streamed, full S/E)
        pl.BlockSpec((tb, S), lambda i: (i, 0)),                   # mask tile
        pl.BlockSpec((E, E), lambda i: (0, 0)),                    # W_eff (resident)
        pl.BlockSpec((1, E), lambda i: (0, 0)),                    # w_pol (resident)
        pl.BlockSpec((1, 1), lambda i: (0, 0),
                     memory_space=pltpu.MemorySpace.SMEM),         # b_pol scalar
    ]
    bs_spec = pl.BlockSpec((tb, S), lambda i: (i, 0))
    att_spec = pl.BlockSpec((tb, _LANES), lambda i: (i, 0))
    cparams = pltpu.CompilerParams(
        dimension_semantics=("parallel",),         # batch tiles independent (2 TCs on v7x)
        vmem_limit_bytes=vmem_limit)
    kern = functools.partial(attended_polarity_kernel, s_chunk=s_chunk)

    if return_attn_pol:
        out_shapes = (
            jax.ShapeDtypeStruct((b_pad, S), jnp.float32),          # attn_flattened
            jax.ShapeDtypeStruct((b_pad, S), jnp.float32),          # raw_polarity
            jax.ShapeDtypeStruct((b_pad, _LANES), jnp.float32),     # attended (lane slab)
        )
        grid_spec = pltpu.PrefetchScalarGridSpec(
            num_scalar_prefetch=0, grid=grid,
            in_specs=in_specs, out_specs=[bs_spec, bs_spec, att_spec])
        attn_p, pol_p, att_slab = pl.pallas_call(
            kern, out_shape=out_shapes, grid_spec=grid_spec, compiler_params=cparams,
        )(x_in, m_in, w_eff, w_pol, b_pol)
    else:
        # Loss-only path: attn/pol stay in VMEM scratch (saves 2*B*S*4 bytes of HBM writes).
        def kern_loss_only(x_ref, m_ref, we_ref, wp_ref, bp_ref, att_ref, attn_s, pol_s):
            kern(x_ref, m_ref, we_ref, wp_ref, bp_ref, attn_s, pol_s, att_ref)
        grid_spec = pltpu.PrefetchScalarGridSpec(
            num_scalar_prefetch=0, grid=grid,
            in_specs=in_specs, out_specs=[att_spec],
            scratch_shapes=[pltpu.VMEM((tb, S), jnp.float32),
                            pltpu.VMEM((tb, S), jnp.float32)])
        (att_slab,) = pl.pallas_call(
            kern_loss_only,
            out_shape=(jax.ShapeDtypeStruct((b_pad, _LANES), jnp.float32),),
            grid_spec=grid_spec, compiler_params=cparams,
        )(x_in, m_in, w_eff, w_pol, b_pol)
        attn_p = pol_p = None

    attended = att_slab[:B, 0]

    # HingeEmbeddingLoss(beta) with target = -beta (never the +1 branch):
    # mean over batch of max(0, beta - attended*labels). Done wrapper-side over the per-row
    # kernel outputs so the batch grid axis stays fully 'parallel' (no cross-tile accumulator).
    loss = jnp.mean(jnp.maximum(0.0, beta - attended * labels))
    if return_attn_pol:
        return loss, attended, attn_p[:B, :S], pol_p[:B, :S]
    return loss, attended, None, None


def reference_forward(x, m, wq, wk, w_pol, b_pol, labels, beta=1.0):
    """Pure-JAX reference of the same math (un-folded projections, exact divisions)."""
    B, S, E = x.shape
    cnt = jnp.sum(m, axis=1, keepdims=True)
    qin = jnp.sum(x * m[:, :, None], axis=1) / jnp.maximum(cnt, 1.0)
    q = qin @ wq
    k = jnp.einsum('bse,ef->bsf', x, wk)
    scores = jnp.einsum('be,bse->bs', q, k) / math.sqrt(E)
    scores = jnp.where(m > 0.0, scores, _NEG_INF)
    attn = jax.nn.softmax(scores, axis=-1)
    pol = jnp.einsum('bse,e->bs', x, w_pol[0]) + b_pol[0, 0]
    attended = jnp.sum(attn * pol, axis=1)
    attended = jnp.where((cnt[:, 0] > 0.0) & ~jnp.isnan(attended), attended, 0.0)
    loss = jnp.mean(jnp.maximum(0.0, beta - attended * labels))
    return loss, attended, attn, pol


if __name__ == "__main__":
    B, S, E, V = 16, 16, 32, 50     # batch, seq, embed_dim, vocab (embed_dim=200 in prod)
    beta = 1.0

    key = jax.random.PRNGKey(0)
    k_emb, k_q, k_k, k_pol, k_idx, k_lab, k_len = jax.random.split(key, 7)

    # deterministic synthetic parameters (encoder embedding + attention + polarity head)
    emb = jax.random.normal(k_emb, (V, E), dtype=jnp.float32) * 0.1
    wq = jax.random.normal(k_q, (E, E), dtype=jnp.float32) / math.sqrt(E)
    wk = jax.random.normal(k_k, (E, E), dtype=jnp.float32) / math.sqrt(E)
    w_pol = jax.random.normal(k_pol, (1, E), dtype=jnp.float32) * 0.1
    b_pol = jnp.full((1, 1), 0.05, dtype=jnp.float32)

    # data_sentense = (sentences, labels, _); sentences = (raw_index (S,B), mask (B,S))
    raw_index = jax.random.randint(k_idx, (S, B), 0, V)
    lengths = jax.random.randint(k_len, (B,), 3, S + 1)
    mask = jnp.arange(S)[None, :] < lengths[:, None]                            # (B, S) bool
    labels = jnp.where(jax.random.bernoulli(k_lab, 0.5, (B,)), 1.0, -1.0).astype(jnp.float32)

    # glue: encoder(raw_index, part='neutral') -> (S, B, E), transpose to kernel layout (B, S, E)
    x_neutral = jnp.transpose(emb[raw_index], (1, 0, 2)).astype(jnp.float32)
    mask_f = mask.astype(jnp.float32)

    # pure-JAX reference of the same math
    ref_loss, ref_att, ref_attn, ref_pol = reference_forward(
        x_neutral, mask_f, wq, wk, w_pol, b_pol, labels, beta=beta)

    # 1) default path (auto tile: tb=8 -> grid=(2,), single S chunk)
    loss, attended, attn, raw_pol = attended_polarity_forward(
        x_neutral, mask_f, wq, wk, w_pol, b_pol, labels, beta=beta)
    jax.block_until_ready((loss, attended, attn, raw_pol))
    np.testing.assert_allclose(np.asarray(loss), np.asarray(ref_loss), rtol=2e-3, atol=2e-3)
    np.testing.assert_allclose(np.asarray(attended), np.asarray(ref_att), rtol=2e-3, atol=2e-3)
    np.testing.assert_allclose(np.asarray(attn), np.asarray(ref_attn), rtol=2e-3, atol=2e-3)
    np.testing.assert_allclose(np.asarray(raw_pol), np.asarray(ref_pol), rtol=2e-3, atol=2e-3)

    # 2) chunked-S path (forces the fused two-chunk traversal used at prod sizes)
    loss_c, att_c, attn_c, pol_c = attended_polarity_forward(
        x_neutral, mask_f, wq, wk, w_pol, b_pol, labels, beta=beta, s_chunk=8)
    jax.block_until_ready((loss_c, att_c))
    np.testing.assert_allclose(np.asarray(att_c), np.asarray(ref_att), rtol=2e-3, atol=2e-3)
    np.testing.assert_allclose(np.asarray(attn_c), np.asarray(ref_attn), rtol=2e-3, atol=2e-3)

    # 3) loss-only (training) path: attn/pol stay in VMEM scratch, no HBM writes for them
    loss_l, att_l, _, _ = attended_polarity_forward(
        x_neutral, mask_f, wq, wk, w_pol, b_pol, labels, beta=beta, return_attn_pol=False)
    jax.block_until_ready((loss_l, att_l))
    np.testing.assert_allclose(np.asarray(att_l), np.asarray(ref_att), rtol=2e-3, atol=2e-3)
    np.testing.assert_allclose(np.asarray(loss_l), np.asarray(ref_loss), rtol=2e-3, atol=2e-3)

    print("KERNEL_OK")
</pallas_src>

<mosaic_0001>
module attributes {stable_mosaic.version = 11 : i64} {
  func.func @attended_polarity_kernel(%arg0: i32, %arg1: memref<8x16x32xf32, #tpu.memory_space<vmem>>, %arg2: memref<8x16xf32, #tpu.memory_space<vmem>>, %arg3: memref<32x32xf32, #tpu.memory_space<vmem>>, %arg4: memref<1x32xf32, #tpu.memory_space<vmem>>, %arg5: memref<1x1xf32, #tpu.memory_space<smem>>, %arg6: memref<8x16xf32, #tpu.memory_space<vmem>>, %arg7: memref<8x16xf32, #tpu.memory_space<vmem>>, %arg8: memref<8x128xf32, #tpu.memory_space<vmem>>) attributes {dimension_semantics = [#tpu.dimension_semantics<parallel>], iteration_bounds = array<i64: 2>, scalar_prefetch = 0 : i64, scratch_operands = 0 : i64, tpu.core_type = #tpu.core_type<tc>, window_params = [{transform_indices = @transform_0, window_bounds = array<i64: 8, 16, 32>}, {transform_indices = @transform_1, window_bounds = array<i64: 8, 16>}, {pipeline_mode = #tpu.pipeline_mode<synchronous>, transform_indices = @transform_2, window_bounds = array<i64: 32, 32>}, {pipeline_mode = #tpu.pipeline_mode<synchronous>, transform_indices = @transform_3, window_bounds = array<i64: 1, 32>}, {transform_indices = @transform_4, window_bounds = array<i64: 1, 1>}, {transform_indices = @transform_5, window_bounds = array<i64: 8, 16>}, {transform_indices = @transform_6, window_bounds = array<i64: 8, 16>}, {transform_indices = @transform_7, window_bounds = array<i64: 8, 128>}]} {
    %c0 = arith.constant 0 : index
    %c0_0 = arith.constant 0 : index
    %0 = vector.load %arg2[%c0, %c0_0] : memref<8x16xf32, #tpu.memory_space<vmem>>, vector<8x16xf32>
    %c0_1 = arith.constant 0 : index
    %c0_2 = arith.constant 0 : index
    %1 = vector.load %arg3[%c0_1, %c0_2] : memref<32x32xf32, #tpu.memory_space<vmem>>, vector<32x32xf32>
    %c0_3 = arith.constant 0 : index
    %c0_4 = arith.constant 0 : index
    %2 = vector.load %arg4[%c0_3, %c0_4] : memref<1x32xf32, #tpu.memory_space<vmem>>, vector<1x32xf32>
    %3 = vector.shape_cast %2 : vector<1x32xf32> to vector<1x1x32xf32>
    %c0_5 = arith.constant 0 : index
    %c0_6 = arith.constant 0 : index
    %4 = memref.load %arg5[%c0_5, %c0_6] : memref<1x1xf32, #tpu.memory_space<smem>>
    %cst = arith.constant dense<0.000000e+00> : vector<8xf32>
    %5 = vector.multi_reduction <add>, %0, %cst [1] : vector<8x16xf32> to vector<8xf32>
    %6 = vector.shape_cast %5 : vector<8xf32> to vector<8x1xf32>
    %cst_7 = arith.constant 1.000000e+00 : f32
    %7 = vector.broadcast %cst_7 : f32 to vector<8x1xf32>
    %8 = arith.maximumf %6, %7 : vector<8x1xf32>
    %cst_8 = arith.constant 1.000000e+00 : f32
    %9 = vector.broadcast %cst_8 : f32 to vector<8x1xf32>
    %10 = arith.divf %9, %8 : vector<8x1xf32>
    %c0_9 = arith.constant 0 : index
    %c0_10 = arith.constant 0 : index
    %c0_11 = arith.constant 0 : index
    %11 = vector.load %arg1[%c0_9, %c0_10, %c0_11] : memref<8x16x32xf32, #tpu.memory_space<vmem>>, vector<8x16x32xf32>
    %12 = vector.shape_cast %0 : vector<8x16xf32> to vector<8x16x1xf32>
    %13 = vector.broadcast %12 : vector<8x16x1xf32> to vector<8x16x32xf32>
    %14 = arith.mulf %11, %13 : vector<8x16x32xf32>
    %cst_12 = arith.constant dense<0.000000e+00> : vector<8x32xf32>
    %15 = vector.multi_reduction <add>, %14, %cst_12 [1] : vector<8x16x32xf32> to vector<8x32xf32>
    %16 = vector.broadcast %10 : vector<8x1xf32> to vector<8x32xf32>
    %17 = arith.mulf %15, %16 : vector<8x32xf32>
    %cst_13 = arith.constant dense<0.000000e+00> : vector<8x32xf32>
    %18 = tpu.matmul %17, %1, %cst_13 {dimension_numbers = #tpu.dot_dimension_numbers<[1], [0], [0], [1], [0, 0, 1, 1], [], []>} : vector<8x32xf32>, vector<32x32xf32>, vector<8x32xf32> -> vector<8x32xf32>
    %c0_14 = arith.constant 0 : index
    %c0_15 = arith.constant 0 : index
    %c0_16 = arith.constant 0 : index
    %19 = vector.load %arg1[%c0_14, %c0_15, %c0_16] : memref<8x16x32xf32, #tpu.memory_space<vmem>>, vector<8x16x32xf32>
    %20 = vector.shape_cast %18 : vector<8x32xf32> to vector<8x1x32xf32>
    %21 = vector.broadcast %20 : vector<8x1x32xf32> to vector<8x16x32xf32>
    %22 = arith.mulf %21, %19 : vector<8x16x32xf32>
    %cst_17 = arith.constant dense<0.000000e+00> : vector<8x16xf32>
    %23 = vector.multi_reduction <add>, %22, %cst_17 [2] : vector<8x16x32xf32> to vector<8x16xf32>
    %c0_18 = arith.constant 0 : index
    %c0_19 = arith.constant 0 : index
    %24 = vector.load %arg6[%c0_18, %c0_19] : memref<8x16xf32, #tpu.memory_space<vmem>>, vector<8x16xf32>
    tpu.vector_store %arg6[%c0_18, %c0_19], %23 {strides = array<i32>} : memref<8x16xf32, #tpu.memory_space<vmem>>, vector<8x16xf32>,
    %25 = vector.broadcast %3 : vector<1x1x32xf32> to vector<8x16x32xf32>
    %26 = arith.mulf %25, %19 : vector<8x16x32xf32>
    %cst_20 = arith.constant dense<0.000000e+00> : vector<8x16xf32>
    %27 = vector.multi_reduction <add>, %26, %cst_20 [2] : vector<8x16x32xf32> to vector<8x16xf32>
    %28 = vector.broadcast %4 : f32 to vector<8x16xf32>
    %29 = arith.addf %27, %28 : vector<8x16xf32>
    %c0_21 = arith.constant 0 : index
    %c0_22 = arith.constant 0 : index
    %30 = vector.load %arg7[%c0_21, %c0_22] : memref<8x16xf32, #tpu.memory_space<vmem>>, vector<8x16xf32>
    tpu.vector_store %arg7[%c0_21, %c0_22], %29 {strides = array<i32>} : memref<8x16xf32, #tpu.memory_space<vmem>>, vector<8x16xf32>,
    %cst_23 = arith.constant 0.000000e+00 : f32
    %31 = vector.broadcast %cst_23 : f32 to vector<8x16xf32>
    %32 = arith.cmpf ogt, %0, %31 : vector<8x16xf32>
    %c0_24 = arith.constant 0 : index
    %c0_25 = arith.constant 0 : index
    %33 = vector.load %arg6[%c0_24, %c0_25] : memref<8x16xf32, #tpu.memory_space<vmem>>, vector<8x16xf32>
    %cst_26 = arith.constant -1.000000e+30 : f32
    %34 = vector.broadcast %cst_26 : f32 to vector<8x16xf32>
    %35 = arith.select %32, %33, %34 : vector<8x16xi1>, vector<8x16xf32>
    %cst_27 = arith.constant dense<0xFF800000> : vector<8xf32>
    %36 = vector.multi_reduction <maximumf>, %35, %cst_27 [1] : vector<8x16xf32> to vector<8xf32>
    %37 = vector.shape_cast %36 : vector<8xf32> to vector<8x1xf32>
    %38 = vector.broadcast %37 : vector<8x1xf32> to vector<8x16xf32>
    %39 = arith.subf %35, %38 : vector<8x16xf32>
    %40 = math.exp %39 : vector<8x16xf32>
    %cst_28 = arith.constant dense<0.000000e+00> : vector<8xf32>
    %41 = vector.multi_reduction <add>, %40, %cst_28 [1] : vector<8x16xf32> to vector<8xf32>
    %42 = vector.shape_cast %41 : vector<8xf32> to vector<8x1xf32>
    %cst_29 = arith.constant 1.000000e+00 : f32
    %43 = vector.broadcast %cst_29 : f32 to vector<8x1xf32>
    %44 = arith.divf %43, %42 : vector<8x1xf32>
    %45 = vector.broadcast %44 : vector<8x1xf32> to vector<8x16xf32>
    %46 = arith.mulf %40, %45 : vector<8x16xf32>
    %c0_30 = arith.constant 0 : index
    %c0_31 = arith.constant 0 : index
    %47 = vector.load %arg6[%c0_30, %c0_31] : memref<8x16xf32, #tpu.memory_space<vmem>>, vector<8x16xf32>
    tpu.vector_store %arg6[%c0_30, %c0_31], %46 {strides = array<i32>} : memref<8x16xf32, #tpu.memory_space<vmem>>, vector<8x16xf32>,
    %c0_32 = arith.constant 0 : index
    %c0_33 = arith.constant 0 : index
    %48 = vector.load %arg7[%c0_32, %c0_33] : memref<8x16xf32, #tpu.memory_space<vmem>>, vector<8x16xf32>
    %49 = arith.mulf %46, %48 : vector<8x16xf32>
    %cst_34 = arith.constant dense<0.000000e+00> : vector<8xf32>
    %50 = vector.multi_reduction <add>, %49, %cst_34 [1] : vector<8x16xf32> to vector<8xf32>
    %51 = vector.shape_cast %50 : vector<8xf32> to vector<8x1xf32>
    %cst_35 = arith.constant 0.000000e+00 : f32
    %52 = vector.broadcast %cst_35 : f32 to vector<8x1xf32>
    %53 = arith.cmpf ogt, %6, %52 : vector<8x1xf32>
    %54 = arith.cmpf one, %51, %51 : vector<8x1xf32>
    %cst_36 = arith.constant dense<true> : vector<8x1xi1>
    %55 = arith.xori %54, %cst_36 : vector<8x1xi1>
    %56 = arith.andi %53, %55 : vector<8x1xi1>
    %cst_37 = arith.constant 0.000000e+00 : f32
    %57 = vector.broadcast %cst_37 : f32 to vector<8x1xf32>
    %58 = arith.select %56, %51, %57 : vector<8x1xi1>, vector<8x1xf32>
    %59 = vector.shape_cast %58 : vector<8x1xf32> to vector<8x1xf32>
    %60 = vector.broadcast %59 : vector<8x1xf32> to vector<8x128xf32>
    %c0_38 = arith.constant 0 : index
    %c0_39 = arith.constant 0 : index
    %61 = vector.load %arg8[%c0_38, %c0_39] : memref<8x128xf32, #tpu.memory_space<vmem>>, vector<8x128xf32>
    tpu.vector_store %arg8[%c0_38, %c0_39], %60 {strides = array<i32>} : memref<8x128xf32, #tpu.memory_space<vmem>>, vector<8x128xf32>,
    return
  }
  func.func @transform_0(%arg0: i32) -> (i32, i32, i32) {
    %c0_i32 = arith.constant 0 : i32
    %c0_i32_0 = arith.constant 0 : i32
    %c0_i32_1 = arith.constant 0 : i32
    return %arg0, %c0_i32, %c0_i32_0 : i32, i32, i32
  }
  func.func @transform_1(%arg0: i32) -> (i32, i32) {
    %c0_i32 = arith.constant 0 : i32
    %c0_i32_0 = arith.constant 0 : i32
    return %arg0, %c0_i32 : i32, i32
  }
  func.func @transform_2(%arg0: i32) -> (i32, i32) {
    %c0_i32 = arith.constant 0 : i32
    %c0_i32_0 = arith.constant 0 : i32
    %c0_i32_1 = arith.constant 0 : i32
    return %c0_i32, %c0_i32_0 : i32, i32
  }
  func.func @transform_3(%arg0: i32) -> (i32, i32) {
    %c0_i32 = arith.constant 0 : i32
    %c0_i32_0 = arith.constant 0 : i32
    %c0_i32_1 = arith.constant 0 : i32
    return %c0_i32, %c0_i32_0 : i32, i32
  }
  func.func @transform_4(%arg0: i32) -> (i32, i32) {
    %c0_i32 = arith.constant 0 : i32
    %c0_i32_0 = arith.constant 0 : i32
    %c0_i32_1 = arith.constant 0 : i32
    return %c0_i32, %c0_i32_0 : i32, i32
  }
  func.func @transform_5(%arg0: i32) -> (i32, i32) {
    %c0_i32 = arith.constant 0 : i32
    %c0_i32_0 = arith.constant 0 : i32
    return %arg0, %c0_i32 : i32, i32
  }
  func.func @transform_6(%arg0: i32) -> (i32, i32) {
    %c0_i32 = arith.constant 0 : i32
    %c0_i32_0 = arith.constant 0 : i32
    return %arg0, %c0_i32 : i32, i32
  }
  func.func @transform_7(%arg0: i32) -> (i32, i32) {
    %c0_i32 = arith.constant 0 : i32
    %c0_i32_0 = arith.constant 0 : i32
    return %arg0, %c0_i32 : i32, i32
  }
}

</mosaic_0001>

<bundles_post_ra>
// kernel: tpu_custom_call.1
= control target key start
LH: loop header
LB: loop body
LE: loop exit
PB: predicated region body
PF: predicated region fallthrough
CT: control target
= control target key end

     0   :  { %s2135_s0 = inlined_call_operand.hbm [shape: f32[16,16,32], index: 0, kind: input, shape index: {}]   ;;  %s2136_s1 = inlined_call_operand.hbm [shape: f32[16,16], index: 1, kind: input, shape index: {}]   ;;  %s2137_s2 = inlined_call_operand.hbm [shape: f32[32,32], index: 2, kind: input, shape index: {}]   ;;  %s2138_s3 = inlined_call_operand.vmem [shape: f32[1,32], index: 3, kind: input, shape index: {}]   ;;  %s2139_s4 = inlined_call_operand.<no memory space> [shape: f32[1,1], index: 4, kind: input, shape index: {}]   ;;  %s2140_s5 = inlined_call_operand.hbm [shape: f32[16,16], index: 5, kind: output, shape index: {0}]   ;;  %s2141_s6 = inlined_call_operand.hbm [shape: f32[16,16], index: 6, kind: output, shape index: {1}]   ;;  %s2142_s7 = inlined_call_operand.hbm [shape: f32[16,128], index: 7, kind: output, shape index: {2}]  }
   0x1   :  { %2150 = sst [smem:[#allocation22_spill]] %s2137_s2 }
   0x2   :  { %13 = sst [smem:[#allocation2]] %s2139_s4 }
   0x3   :  { %14 = vsyncpa [#allocation4], 0 }
   0x4   :  { %16 = vsyncpa [#allocation4 + $0x1], 0 }
   0x5   :  { %17 = vsyncpa [#allocation7], 0 }
   0x6   :  { %19 = vsyncpa [#allocation7 + $0x1], 0 }
   0x7   :  { %20 = vsyncpa [#allocation5], 0 }
   0x8   :  { %22 = vsyncpa [#allocation5 + $0x1], 0 }
   0x9   :  { %23 = vsyncpa [#allocation11], 0 }
   0xa   :  { %25 = vsyncpa [#allocation11 + $0x1], 0  ;;  %s1611_s26 = smov 0   ;;  %s1613_s27 = smov 0  }
   0xb   :  { %s1615_s28 = smov 0   ;;  %s1617_s29 = smov 0  }
   0xc LB: > { %2151 = sst [smem:[#allocation18_spill]] %s1558_s28  ;;  %s1632_s4 = sadd.s32 4294967295, %s1562_s29   ;;  %s1562_s29 = sphi %s1617_s29, %s2168_s29   ;;  %s1558_s28 = sphi %s1615_s28, %s2170_s28   ;;  %s1554_s27 = sphi %s1613_s27, %s2172_s27   ;;  %s1550_s26 = sphi %s1611_s26, %s2171_s26  }
   0xd   : > { %s2143_s30 = sadd.s32 4294967294, %s1562_s29   ;;  %p51_p0 = scmp.ne.s32.totalorder %s1554_s27, %s1550_s26 }
   0xe   : > { %p52_p1 = scmp.eq.s32.totalorder %s1632_s4, 0  ;;  %p164_p2 = scmp.eq.s32.totalorder %s1632_s4, 1 }
   0xf   : > { %p170_p3 = scmp.eq.s32.totalorder %s2143_s30, 1  ;;  %p1220_p5 = scmp.ge.s32.totalorder %s1562_s29, 1 }
  0x10   : > { %p1643_p4 = por %p52_p1, %p51_p0  ;;  %p229_p7 = scmp.lt.s32.totalorder %s1562_s29, 3 }
  0x11   : > { %p1648_p6 = por %p170_p3, %p51_p0  ;;  %s2155_s2 = sld [smem:[#allocation22_spill]] }
  0x12   : > { %p1656_p8 = pnand %p1220_p5, %p229_p7  ;;  %s1564_s14 = smov [#allocation8]  }
  0x13   : > { %s2153_s9 = scalar_select %p1648_p6, 1, 0 }
  0x14   : > { %p1261_p9 = pneg %p1656_p8  ;;  %s242_s15 = sshll.u32 %s1564_s14, 4  ;;  %s243_s15 = int_to_ptr.vmem [resolvable:$true] %s242_s15 }
  0x15   : > { %2154 = sst [smem:[#allocation19_spill]] %s2153_s9  ;;  %s1666_s16 = sadd.s32 1, %s1562_s29  }
  0x16   : > { %p1262_p10 = pnand %p1261_p9, %p52_p1  ;;  %2157 = sst [smem:[#allocation20_spill]] %s1666_s16 }
  0x17   : > { %s240_s12 = sshll.u32 %s2155_s2, 4  ;;  %s2144_s17 = smov 128   ;;  %s241_s12 = int_to_ptr.hbm [resolvable:$true] %s240_s12 }
  0x18   : > { %s2145_s18 = smov 8   ;;  %s35_s19 = ssub.s32 %s1562_s29, %s1666_s16 }
  0x19   : > { %1264 = dma.hbm_to_vmem [thread:$0]  (!%p1262_p10), %s241_s12, 512, %s243_s15, [#allocation7], %s2144_s17, %s2144_s17, %s2145_s18  }
  0x1a   : > { %s38_s20 = sadd.s32 1, %s1558_s28  ;;  %p36_p12 = scmp.eq.s32.totalorder %s35_s19, 0 }
  0x1b   : > { %p45_p13 = scmp.ne.s32.totalorder %s1558_s28, %s1554_s27  ;;  %p46_p0 = scmp.eq.s32.totalorder %s1562_s29, 0 }
  0x1c   : > { %p1283_p3 = scmp.lt.s32.totalorder %s1562_s29, 2  ;;  %s1688_s23 = sand.u32 1, %s1558_s28  }
  0x1d   : > { %s1679_s21 = scalar_select %p36_p12, %s1558_s28, %s38_s20  }
  0x1e   : > { %p47_p5 = por %p46_p0, %p45_p13  ;;  %p1683_p7 = por %p164_p2, %p45_p13 }
  0x1f   : > { %2158 = sst [smem:[#allocation21_spill]] %s1679_s21  ;;  %s1246_s24 = sshll.u32 %s1562_s29, 7 }
  0x20   : > { %s1223_s25 = sshll.u32 %s1688_s23, 7  ;;  %s272_s12 = scalar_lea.hbm %s2135_s0, %s1246_s24 }
  0x21   : > { %s273_s14 = sshll.u32 %s272_s12, 4  ;;  %s266_s15 = scalar_lea.vmem [#allocation3], %s1223_s25  ;;  %s274_s14 = int_to_ptr.hbm [resolvable:$true] %s273_s14 }
  0x22   : > { %s275_s19 = sshll.u32 %s266_s15, 4  ;;  %p1697_p2 = pnand %p1283_p3, %p47_p5  ;;  %s276_s19 = int_to_ptr.vmem [resolvable:$true] %s275_s19 }
  0x23   : > { %s285_s30 = sand.u32 1, %s1562_s29   ;;  %s1227_s17 = sshll.u32 %s1688_s23, 3 }
  0x24   : > { %s263_s18 = scalar_lea.sflag [#allocation4], %s1688_s23  ;;  %s1368_s2 = sshra.s32 %s274_s14, 4  ;;  %s1369_s2 = int_to_ptr.hbm [resolvable:$true] %s1368_s2 }
  0x25   : > { %s1370_s21 = scalar_lea.hbm %s1369_s2, 128  ;;  %p1372_p10 = pneg %p1697_p2 }
  0x26   : > { %p1371_p9 = scmp.ne.s32.totalorder %s1369_s2, %s1370_s21  ;;  %s1375_s10 = scalar_lea.hbm %s2135_s0, 256 }
  0x27   : > { %p1376_p0 = scmp.lt.s32.totalorder %s1369_s2, %s2135_s0  ;;  %p1377_p3 = scmp.lt.s32.totalorder %s1375_s10, %s1370_s21 }
  0x28   : > { %p1373_p12 = pnand %p1372_p10, %p1371_p9 }
  0x29   : > { %p1378_p5 = por %p1377_p3, %p1376_p0 }
  0x2a   : > { %p1374_p13 = pneg %p1373_p12 }
  0x2c   : > { %p1379_p11 = pnand %p1378_p5, %p1374_p13 }
  0x2e   : > { %1382 = shalt.err (!%p1379_p11)
}
  0x2f   : > { %s2161_s23 = smov 8   ;;  %s2162_s15 = smov 128  }
  0x30   : > { %1268 = dma.hbm_to_vmem [thread:$0]  (!%p1697_p2), %s274_s14, 2048, %s276_s19, %s263_s18, %s2162_s15, %s2162_s15, %s2161_s23  }
  0x31   : > { %s1228_s28 = sshll.u32 %s1562_s29, 3  ;;  %s289_s16 = scalar_lea.vmem [#allocation6], %s1227_s17 }
  0x32   : > { %s297_s24 = sshll.u32 %s289_s16, 4  ;;  %s293_s11 = scalar_lea.hbm %s2136_s1, %s1228_s28  ;;  %s298_s24 = int_to_ptr.vmem [resolvable:$true] %s297_s24 }
  0x33   : > { %s295_s2 = sshll.u32 %s293_s11, 4  ;;  %s286_s21 = scalar_lea.sflag [#allocation7], %s285_s30  ;;  %s296_s2 = int_to_ptr.hbm [resolvable:$true] %s295_s2 }
  0x34   : > { %s1398_s10 = sshra.s32 %s296_s2, 4  ;;  %s1405_s16 = scalar_lea.hbm %s2136_s1, 16  ;;  %s1399_s10 = int_to_ptr.hbm [resolvable:$true] %s1398_s10 }
  0x35   : > { %s1400_s12 = scalar_lea.hbm %s1399_s10, 8  ;;  %p1406_p13 = scmp.lt.s32.totalorder %s1399_s10, %s2136_s1 }
  0x36   : > { %p1401_p11 = scmp.ne.s32.totalorder %s1399_s10, %s1400_s12  ;;  %p1407_p0 = scmp.lt.s32.totalorder %s1405_s16, %s1400_s12 }
  0x38   : > { %p1403_p9 = pnand %p1401_p11, %p1372_p10  ;;  %p1408_p3 = por %p1407_p0, %p1406_p13 }
  0x3a   : > { %p1404_p12 = pneg %p1403_p9 }
  0x3c   : > { %p1409_p5 = pnand %p1408_p3, %p1404_p12 }
  0x3e   : > { %1412 = shalt.err (!%p1409_p5)
}
  0x3f   : > { %1271 = dma.hbm_to_vmem [thread:$0]  (!%p1697_p2), %s296_s2, 128, %s298_s24, %s286_s21  }
  0x40   : > { %306 = sbr.rel (%p1656_p8) target bundleno = 982 (0x3d6), region = 40  ;;  %s1738_s28 = sand.u32 (!%p1656_p8), 1, %s1554_s27  }
  0x41   : > { %s1230_s30 = sshll.u32 (!%p1656_p8), %s1738_s28, 7  ;;  %s309_s9 = scalar_lea.sflag (!%p1656_p8), [#allocation4], %s1738_s28 }
  0x42   : > { %s1742_s23 = scalar_lea.vmem (!%p1656_p8), [#allocation3], %s1230_s30 }
  0x45   : > { %1529 = dma.done.wait (%p1643_p4), %s309_s9, 2048  }
  0x46   : > { %1531 = vsyncadd (%p1643_p4), %s309_s9, 4294965248  ;;  %s318_s13 = sand.u32 1, %s1632_s4   ;;  %s1750_s20 = sshll.u32 %s1738_s28, 3 }
  0x47   : > { %s319_s15 = scalar_lea.sflag [#allocation7], %s318_s13  ;;  %s322_s24 = scalar_lea.vmem [#allocation6], %s1750_s20 }
  0x48   : > { %1533 = dma.done.wait (%p1643_p4), %s319_s15, 128  }
  0x49   : > { %1535 = vsyncadd (%p1643_p4), %s319_s15, 4294967168 }
  0x4a   : > { %1537 = dma.done.wait (%p52_p1), [#allocation7], 512  }
  0x4b   : > { %1539 = vsyncadd (%p52_p1), [#allocation7], 4294966784  ;;  %v419_v0 = vlaneseq  ;;  %vm382_vm0 = vcmask 130048   ;;  %v1764_v2 = vld [vmem:[%s322_s24] sm:$0xff]  ;;  %v1779_v22 = vld [vmem:[%s1742_s23 + $0x18] sm:$0xff]  ;;  %vm538_vm1 = vcmask 261120  }
  0x4c   : > { %v383_v3 = vsel %vm382_vm0, %v1764_v2, 0.0  ;;  %v444_v4 = vperm.slane %v1764_v2, 2  ;;  %v418_v5 = vperm.slane %v1764_v2, 0  ;;  %v431_v7 = vperm.slane %v1764_v2, 1  ;;  %v1782_v23 = vld [vmem:[%s1742_s23 + $0x10] sm:$0xff]  ;;  %v1788_v27 = vld [vmem:[%s1742_s23 + $0x8] sm:$0xff] }
  0x4d   : > { %v420_v1 = vshrl.u32 %v419_v0, 7  ;;  %384 = vadd.xlane.f32.xlu0 %v383_v3  ;;  %v457_v8 = vperm.slane %v1764_v2, 3  ;;  %v496_v9 = vperm.slane %v1764_v2, 6  ;;  %v470_v10 = vperm.slane %v1764_v2, 4  ;;  %v1791_v28 = vld [vmem:[%s1742_s23 + $0x38] sm:$0xff]  ;;  %v1794_v29 = vld [vmem:[%s1742_s23] sm:$0xff] }
  0x4e   : > { %v483_v11 = vperm.slane %v1764_v2, 5  ;;  %v509_v12 = vperm.slane %v1764_v2, 7  ;;  %v1797_v30 = vld [vmem:[%s1742_s23 + $0x20] sm:$0xff]  ;;  %v1800_v31 = vld [vmem:[%s1742_s23 + $0x28] sm:$0xff]  ;;  %v1805_v34 = vld [vmem:[%s1742_s23 + $0x30] sm:$0xff]  ;;  %vm644_vm6 = vcmask 1041409  }
  0x4f   : > { %1324 = vset.pattern.permute.xlu2 %v420_v1  ;;  %1323 = vset.pattern.permute.xlu1 %v420_v1  ;;  %v427_v6 = vadd.s32 8, %v420_v1  ;;  %v1808_v35 = vld [vmem:[%s1742_s23 + $0x40] sm:$0xff]  ;;  %v1817_v41 = vld [vmem:[%s1742_s23 + $0x48] sm:$0xff]  ;;  %v1841_v63 = vld [vmem:[%s1742_s23 + $0x50] sm:$0xff]  ;;  %vm647_vm7 = vcmask 1042434   ;;  %vm650_vm8 = vcmask 1043459  }
  0x50   : > { %1322 = vset.pattern.permute.xlu0 %v420_v1  ;;  %v1826_v49 = vld [vmem:[%s1742_s23 + $0x60] sm:$0xff]  ;;  %v1829_v51 = vld [vmem:[%s1742_s23 + $0x68] sm:$0xff]  ;;  %vm653_vm9 = vcmask 1044484   ;;  %vm656_vm10 = vcmask 1045509   ;;  %vm659_vm11 = vcmask 1046534   ;;  %vm662_vm12 = vcmask 1047559  }
  0x51   : > { %vm795_vm13 = vcmask 130112   ;;  %s1979_s11 = scalar_lea.vmem [#allocation9], %s1750_s20  ;;  %vm960_vm14 = vcmp.gt.f32.partialorder %v1764_v2, 0.0  ;;  %s381_s2 = sld [smem:[#allocation2]] }
  0x52   : > { %s366_s21 = scalar_lea.vmem [#allocation10], %s1750_s20  ;;  %s2058_s10 = sshll.u32 %s1632_s4, 3 }
  0x53   : > { %s1035_s14 = scalar_lea.hbm %s2141_s6, %s2058_s10  ;;  %s1037_s16 = sshll.u32 %s366_s21, 4  ;;  %s1038_s16 = int_to_ptr.vmem [resolvable:$true] %s1037_s16 }
  0x54   : > { %s1039_s17 = sshll.u32 %s1035_s14, 4  ;;  %s2068_s19 = scalar_lea.sflag [#allocation11], %s318_s13  ;;  %s1040_s17 = int_to_ptr.hbm [resolvable:$true] %s1039_s17 }
  0x55   : > { %s1442_s30 = sshra.s32 %s1040_s17, 4  ;;  %s1448_s24 = scalar_lea.hbm %s2141_s6, 16  ;;  %s1443_s30 = int_to_ptr.hbm [resolvable:$true] %s1442_s30 }
  0x56   : > { %s1444_s9 = scalar_lea.hbm %s1443_s30, 8  ;;  %p1449_p2 = scmp.lt.s32.totalorder %s1443_s30, %s2141_s6 }
  0x57   : > { %449 = vperm.xlu1 %1323, %v444_v4   ;;  %423 = vperm.xlu2 %1324, %v418_v5   ;;  %p1445_p1 = scmp.ne.s32.totalorder %s1443_s30, %s1444_s9  ;;  %p1450_p10 = scmp.lt.s32.totalorder %s1448_s24, %s1444_s9 }
  0x59   : > { %p1446_p4 = pnand %p1445_p1, %p1683_p7  ;;  %p1451_p11 = por %p1450_p10, %p1449_p2 }
  0x5b   : > { %p1447_p8 = pneg %p1446_p4 }
  0x5d   : > { %p1452_p9 = pnand %p1451_p11, %p1447_p8 }
  0x5f   : > { %1325 = vset.pattern.permute.xlu1 %v427_v6  ;;  %1326 = vset.pattern.permute.xlu2 %v427_v6 }
  0x61   : > { %436 = vperm.xlu0 %1322, %v431_v7  }
  0x67   : > { %442 = vperm.xlu1 %1325, %v431_v7   ;;  %455 = vperm.xlu2 %1326, %v444_v4  }
  0x69   : > { %1328 = vset.pattern.permute.xlu0 %v427_v6 }
  0x6f   : > { %429 = vperm.xlu1 %1325, %v418_v5   ;;  %1327 = vset.pattern.permute.xlu2 %v420_v1 }
  0x71   : > { %507 = vperm.xlu0 %1328, %v496_v9  }
  0x77   : > { %468 = vperm.xlu1 %1325, %v457_v8   ;;  %462 = vperm.xlu2 %1327, %v457_v8   ;;  %v1848_v8 = vld [vmem:[%s1742_s23 + $0x58] sm:$0xff] }
  0x7f   : > { %481 = vperm.xlu1 %1325, %v470_v10   ;;  %475 = vperm.xlu2 %1327, %v470_v10   ;;  %v378_v10 = vld [vmem:[#allocation8 + $0x10] sm:$0xff] }
  0x87   : > { %494 = vperm.xlu1 %1325, %v483_v11   ;;  %488 = vperm.xlu2 %1327, %v483_v11  }
  0x8f   : > { %1329 = vset.pattern.permute.xlu1 %v420_v1  ;;  %501 = vperm.xlu2 %1327, %v496_v9   ;;  %v379_v9 = vld [vmem:[#allocation8 + $0x18] sm:$0xff] }
  0x90   : > { %678 = vmatpush.msra.mxu0 %v379_v9 }
  0x92   : > { %679 = vmatpush.msra.mxu0 %v378_v10 }
  0x97   : > { %514 = vperm.xlu1 %1329, %v509_v12   ;;  %1330 = vset.pattern.permute.xlu2 %v427_v6 }
  0x9f   : > { %520 = vperm.xlu2 %1330, %v509_v12  }
  0xb1   : > { %v424_v13 = vpop.permute.xlu2 %423 }
  0xb2   : > { %v522_v38 = vmul.f32 %v424_v13, %v1794_v29 }
  0xb4   : > { %v539_v54 = vsel %vm538_vm1, %v522_v38, 0.0 }
  0xc0   : > { %v1776_v19 = vpop.xlane.xlu0 %384 }
  0xc1   : > { %v456_v14 = vpop.permute.xlu2 %455  ;;  %v1785_v26 = vmax.f32 %v1776_v19, 1.0 }
  0xc2   : > { %v527_v40 = vmul.f32 %v456_v14, %v1800_v31 }
  0xc3   : > { %1332 = vrcp.f32 %v1785_v26  ;;  %vm392_vm2 = vweird.f32 %v1785_v26 }
  0xc4   : > { %v558_v55 = vsel %vm538_vm1, %v527_v40, 0.0 }
  0xc9   : > { %v450_v15 = vpop.permute.xlu1 %449  ;;  %v1834_v57 = vpop.eup %1332 }
  0xca   : > { %v526_v39 = vmul.f32 %v450_v15, %v1797_v30  ;;  %v388_v6 = vmul.f32 %v1834_v57, %v1785_v26  ;;  %vm393_vm3 = vweird.f32 %v1834_v57 }
  0xcb   : > { %vm1867_vm4 = vmor %vm392_vm2, %vm393_vm3 }
  0xcc   : > { %v557_v58 = vsel %vm538_vm1, %v526_v39, 0.0 }
  0xcd   : > { %v559_v11 = vadd.f32 %v558_v55, %v557_v58  ;;  %v396_v58 = vand.u32 2147483647, %v1785_v26 }
  0xcf   : > { %vm397_vm5 = vcmp.eq.f32.partialorder %v396_v58, 8.507059e+37 }
  0xd1   : > { %v463_v16 = vpop.permute.xlu2 %462 }
  0xd2   : > { %v528_v42 = vmul.f32 %v463_v16, %v1805_v34 }
  0xd3   : > { %v437_v24 = vpop.permute.xlu0 %436 }
  0xd4   : > { %v524_v33 = vmul.f32 %v437_v24, %v1782_v23  ;;  %v566_v59 = vsel %vm538_vm1, %v528_v42, 0.0 }
  0xd6   : > { %v548_v45 = vsel %vm538_vm1, %v524_v33, 0.0  ;;  %v376_v33 = vld [vmem:[#allocation8] sm:$0xff] }
  0xd9   : > { %v443_v17 = vpop.permute.xlu1 %442  ;;  %v476_v18 = vpop.permute.xlu2 %475 }
  0xda   : > { %v525_v32 = vmul.f32 %v443_v17, %v1779_v22  ;;  %v530_v44 = vmul.f32 %v476_v18, %v1808_v35  ;;  %v377_v18 = vld [vmem:[#allocation8 + $0x8] sm:$0xff] }
  0xdb   : > { %680 = vmatpush.msra.mxu0 %v377_v18 }
  0xdc   : > { %v549_v43 = vsel %vm538_vm1, %v525_v32, 0.0  ;;  %v575_v60 = vsel %vm538_vm1, %v530_v44, 0.0 }
  0xdd   : > { %v550_v56 = vadd.f32 %v549_v43, %v548_v45  ;;  %681 = vmatpush.msra.mxu0 %v376_v33 }
  0xdf   : > { %v551_v7 = vrot.slane %v550_v56, 4 }
  0xe1   : > { %v430_v20 = vpop.permute.xlu1 %429  ;;  %v489_v21 = vpop.permute.xlu2 %488  ;;  %v552_v32 = vadd.f32 %v551_v7, %v550_v56 }
  0xe2   : > { %v523_v36 = vmul.f32 %v430_v20, %v1788_v27  ;;  %v532_v12 = vmul.f32 %v489_v21, %v1841_v63 }
  0xe3   : > { %v508_v52 = vpop.permute.xlu0 %507  ;;  %v553_v45 = vrot.slane %v552_v32, 2 }
  0xe4   : > { %v540_v47 = vsel %vm538_vm1, %v523_v36, 0.0  ;;  %v535_v4 = vmul.f32 %v508_v52, %v1829_v51  ;;  %v560_v36 = vrot.slane %v559_v11, 4 }
  0xe5   : > { %v541_v62 = vadd.f32 %v540_v47, %v539_v54  ;;  %v398_v54 = vand.u32 2147483648, %v1785_v26  ;;  %v1876_v26 = vld [vmem:[%s1742_s23 + $0x70] sm:$0xff] }
  0xe6   : > { %v594_v16 = vsel %vm538_vm1, %v535_v4, 0.0  ;;  %v561_v47 = vadd.f32 %v560_v36, %v559_v11 }
  0xe7   : > { %v542_v13 = vrot.slane %v541_v62, 4  ;;  %v399_v7 = vor.u32 1.1754944e-38, %v398_v54 }
  0xe9   : > { %v469_v25 = vpop.permute.xlu1 %468  ;;  %v502_v50 = vpop.permute.xlu2 %501  ;;  %v543_v39 = vadd.f32 %v542_v13, %v541_v62 }
  0xea   : > { %v529_v37 = vmul.f32 %v469_v25, %v1791_v28  ;;  %v534_v3 = vmul.f32 %v502_v50, %v1826_v49  ;;  %v389_v25 = vsub.f32 1.0, %v388_v6 }
  0xeb   : > { %v544_v50 = vrot.slane %v543_v39, 2 }
  0xec   : > { %v567_v48 = vsel %vm538_vm1, %v529_v37, 0.0  ;;  %v593_v15 = vsel %vm538_vm1, %v534_v3, 0.0  ;;  %v584_v37 = vsel %vm538_vm1, %v532_v12, 0.0  ;;  %v390_v44 = vmul.f32 %v1834_v57, %v389_v25 }
  0xed   : > { %v568_v1 = vadd.f32 %v567_v48, %v566_v59  ;;  %v595_v21 = vadd.f32 %v594_v16, %v593_v15  ;;  %v554_v59 = vadd.f32 %v553_v45, %v552_v32  ;;  %v562_v3 = vrot.slane %v561_v47, 2 }
  0xee   : > { %v391_v56 = vadd.f32 %v1834_v57, %v390_v44 }
  0xef   : > { %v569_v14 = vrot.slane %v568_v1, 4  ;;  %v596_v48 = vrot.slane %v595_v21, 4  ;;  %v555_v12 = vrot.slane %v554_v59, 1 }
  0xf0   : > { %v395_v11 = vsel %vm1867_vm4, %v1834_v57, %v391_v56 }
  0xf1   : > { %v482_v46 = vpop.permute.xlu1 %481  ;;  %v570_v40 = vadd.f32 %v569_v14, %v568_v1  ;;  %v597_v4 = vadd.f32 %v596_v48, %v595_v21  ;;  %v563_v14 = vadd.f32 %v562_v3, %v561_v47  ;;  %v556_v36 = vadd.f32 %v555_v12, %v554_v59 }
  0xf2   : > { %v531_v53 = vmul.f32 %v482_v46, %v1817_v41 }
  0xf3   : > { %v571_v52 = vrot.slane %v570_v40, 2  ;;  %v598_v15 = vrot.slane %v597_v4, 2  ;;  %v564_v57 = vrot.slane %v563_v14, 1 }
  0xf4   : > { %v576_v61 = vsel %vm538_vm1, %v531_v53, 0.0 }
  0xf5   : > { %v577_v5 = vadd.f32 %v576_v61, %v575_v60  ;;  %v1863_v61 = vld [vmem:[%s1742_s23 + $0x78] sm:$0xff]  ;;  %v572_v6 = vadd.f32 %v571_v52, %v570_v40  ;;  %v599_v21 = vadd.f32 %v598_v15, %v597_v4 }
  0xf7   : > { %v578_v20 = vrot.slane %v577_v5, 4  ;;  %v600_v52 = vrot.slane %v599_v21, 1 }
  0xf9   : > { %v495_v17 = vpop.permute.xlu1 %494  ;;  %v579_v43 = vadd.f32 %v578_v20, %v577_v5  ;;  %v521_v62 = vpop.permute.xlu2 %520  ;;  %v545_v5 = vadd.f32 %v544_v50, %v543_v39  ;;  %v400_v20 = vsel %vm397_vm5, %v399_v7, %v395_v11  ;;  %v565_v50 = vadd.f32 %v564_v57, %v563_v14 }
  0xfa   : > { %v533_v24 = vmul.f32 %v495_v17, %v1848_v8  ;;  %v537_v10 = vmul.f32 %v521_v62, %v1863_v61  ;;  %v573_v17 = vrot.slane %v572_v6, 1  ;;  %v612_v33 = vrot.slane %v400_v20, 1 }
  0xfb   : > { %v580_v55 = vrot.slane %v579_v43, 2  ;;  %v546_v16 = vrot.slane %v545_v5, 1  ;;  %v616_v58 = vrot.slane %v400_v20, 5  ;;  %v601_v4 = vadd.f32 %v600_v52, %v599_v21 }
  0xfc   : > { %v585_v38 = vsel %vm538_vm1, %v533_v24, 0.0  ;;  %v603_v32 = vsel %vm538_vm1, %v537_v10, 0.0  ;;  %v574_v40 = vadd.f32 %v573_v17, %v572_v6  ;;  %v628_v45 = vmul.f32 %v612_v33, %v556_v36 }
  0xfd   : > { %v586_v42 = vadd.f32 %v585_v38, %v584_v37  ;;  %v581_v9 = vadd.f32 %v580_v55, %v579_v43  ;;  %v547_v39 = vadd.f32 %v546_v16, %v545_v5  ;;  %v613_v43 = vrot.slane %v400_v20, 2 }
  0xfe   : > { %v643_v62 = vrot.slane %v628_v45, 7  ;;  %v617_v11 = vrot.slane %v400_v20, 6  ;;  %v618_v17 = vrot.slane %v400_v20, 7 }
  0xff   : > { %v587_v46 = vrot.slane %v586_v42, 4  ;;  %v582_v24 = vrot.slane %v581_v9, 1  ;;  %v627_v54 = vmul.f32 %v547_v39, %v400_v20  ;;  %v629_v59 = vmul.f32 %v613_v43, %v565_v50 }
 0x100   : > { %v633_v14 = vmul.f32 %v617_v11, %v601_v4 }
 0x101   : > { %v588_v53 = vadd.f32 %v587_v46, %v586_v42  ;;  %v583_v44 = vadd.f32 %v582_v24, %v581_v9  ;;  %v614_v46 = vrot.slane %v400_v20, 3  ;;  %v645_v7 = vsel %vm644_vm6, %v643_v62, %v627_v54 }
 0x102   : > { %v646_v9 = vrot.slane %v629_v59, 6  ;;  %v658_v33 = vrot.slane %v633_v14, 2 }
 0x103   : > { %v589_v60 = vrot.slane %v588_v53, 2  ;;  %v630_v55 = vmul.f32 %v614_v46, %v574_v40 }
 0x104   : > { %v648_v15 = vsel %vm647_vm7, %v646_v9, %v645_v7 }
 0x105   : > { %v590_v13 = vadd.f32 %v589_v60, %v588_v53  ;;  %v615_v53 = vrot.slane %v400_v20, 4  ;;  %v649_v5 = vrot.slane %v630_v55, 5 }
 0x107   : > { %v591_v37 = vrot.slane %v590_v13, 1  ;;  %v631_v60 = vmul.f32 %v615_v53, %v583_v44 }
 0x109   : > { %v515_v18 = vpop.permute.xlu1 %514  ;;  %v592_v47 = vadd.f32 %v591_v37, %v590_v13  ;;  %v652_v10 = vrot.slane %v631_v60, 4 }
 0x10a   : > { %v536_v25 = vmul.f32 %v515_v18, %v1876_v26  ;;  %v651_v18 = vsel %vm650_vm8, %v649_v5, %v648_v15 }
 0x10b   : > { %v632_v3 = vmul.f32 %v616_v58, %v592_v47  ;;  %v654_v24 = vsel %vm653_vm9, %v652_v10, %v651_v18 }
 0x10c   : > { %v602_v38 = vsel %vm538_vm1, %v536_v25, 0.0 }
 0x10d   : > { %v604_v42 = vadd.f32 %v603_v32, %v602_v38  ;;  %v655_v13 = vrot.slane %v632_v3, 3 }
 0x10f   : > { %v605_v48 = vrot.slane %v604_v42, 4  ;;  %v657_v32 = vsel %vm656_vm10, %v655_v13, %v654_v24 }
 0x110   : > { %v660_v37 = vsel %vm659_vm11, %v658_v33, %v657_v32 }
 0x111   : > { %v606_v56 = vadd.f32 %v605_v48, %v604_v42 }
 0x113   : > { %v607_v1 = vrot.slane %v606_v56, 2 }
 0x115   : > { %v608_v6 = vadd.f32 %v607_v1, %v606_v56 }
 0x117   : > { %v609_v12 = vrot.slane %v608_v6, 1 }
 0x119   : > { %v610_v16 = vadd.f32 %v609_v12, %v608_v6 }
 0x11b   : > { %v634_v25 = vmul.f32 %v618_v17, %v610_v16 }
 0x11d   : > { %v661_v36 = vrot.slane %v634_v25, 1 }
 0x11f   : > { %v663_v57 = vsel %vm662_vm12, %v661_v36, %v660_v37 }
 0x120   : > { %1236 = vmatmul.msk.f32.vlgmr.msra.gmra.mxu0 %vm538_vm1, %v663_v57 }
 0x19d   : > { %v683_v21 = vpop.f32.mrf.mxu0 }
 0x19e   : > { %v694_v38 = vperm.slane %v683_v21, 0  ;;  %v687_v20 = vrot.slane %v683_v21, 1  ;;  %v688_v39 = vrot.slane %v683_v21, 2  ;;  %v689_v44 = vrot.slane %v683_v21, 3 }
 0x19f   : > { %v690_v56 = vrot.slane %v683_v21, 4  ;;  %v691_v4 = vrot.slane %v683_v21, 5  ;;  %v692_v6 = vrot.slane %v683_v21, 6  ;;  %v693_v16 = vrot.slane %v683_v21, 7 }
 0x1a0   : > { %v711_v40 = vmul.f32 %v694_v38, %v1788_v27  ;;  %v710_v42 = vmul.f32 %v694_v38, %v1794_v29  ;;  %v695_v43 = vperm.slane %v687_v20, 0  ;;  %v696_v48 = vperm.slane %v688_v39, 0 }
 0x1a1   : > { %v697_v52 = vperm.slane %v689_v44, 0  ;;  %v698_v62 = vperm.slane %v690_v56, 0  ;;  %v699_v10 = vperm.slane %v691_v4, 0  ;;  %v700_v12 = vperm.slane %v692_v6, 0 }
 0x1a2   : > { %v729_v45 = vsel %vm538_vm1, %v711_v40, 0.0  ;;  %v726_v46 = vsel %vm538_vm1, %v710_v42, 0.0  ;;  %v712_v47 = vmul.f32 %v695_v43, %v1782_v23  ;;  %v714_v53 = vmul.f32 %v696_v48, %v1797_v30 }
 0x1a3   : > { %730 = vadd.xlane.f32.xlu2 %v729_v45  ;;  %727 = vadd.xlane.f32.xlu1 %v726_v46  ;;  %v713_v54 = vmul.f32 %v695_v43, %v1779_v22  ;;  %v716_v55 = vmul.f32 %v697_v52, %v1805_v34  ;;  %v717_v1 = vmul.f32 %v697_v52, %v1791_v28  ;;  %v701_v25 = vperm.slane %v693_v16, 0  ;;  %v1927_v52 = vld [vmem:[%s2138_s3] ss:$0 sm:$0xff] }
 0x1a4   : > { %v732_v50 = vsel %vm538_vm1, %v712_v47, 0.0  ;;  %v738_v58 = vsel %vm538_vm1, %v714_v53, 0.0  ;;  %v715_v3 = vmul.f32 %v696_v48, %v1800_v31  ;;  %v719_v5 = vmul.f32 %v698_v62, %v1817_v41 }
 0x1a5   : > { %733 = vadd.xlane.f32.xlu0 %v732_v50  ;;  %v735_v59 = vsel %vm538_vm1, %v713_v54, 0.0  ;;  %v744_v60 = vsel %vm538_vm1, %v716_v55, 0.0  ;;  %v747_v7 = vsel %vm538_vm1, %v717_v1, 0.0  ;;  %v720_v13 = vmul.f32 %v699_v10, %v1841_v63 }
 0x1a6   : > { %v741_v9 = vsel %vm538_vm1, %v715_v3, 0.0  ;;  %v753_v11 = vsel %vm538_vm1, %v719_v5, 0.0  ;;  %v718_v14 = vmul.f32 %v698_v62, %v1808_v35  ;;  %v722_v15 = vmul.f32 %v700_v12, %v1826_v49 }
 0x1a7   : > { %v756_v17 = vsel %vm538_vm1, %v720_v13, 0.0  ;;  %v723_v32 = vmul.f32 %v700_v12, %v1829_v51  ;;  %v721_v33 = vmul.f32 %v699_v10, %v1848_v8  ;;  %v725_v36 = vmul.f32 %v701_v25, %v1863_v61 }
 0x1a8   : > { %v750_v18 = vsel %vm538_vm1, %v718_v14, 0.0  ;;  %v762_v24 = vsel %vm538_vm1, %v722_v15, 0.0  ;;  %v724_v38 = vmul.f32 %v701_v25, %v1876_v26  ;;  %v1922_v50 = vand.u32 127, %v419_v0 }
 0x1a9   : > { %v765_v37 = vsel %vm538_vm1, %v723_v32, 0.0  ;;  %v759_v57 = vsel %vm538_vm1, %v721_v33, 0.0  ;;  %v771_v21 = vsel %vm538_vm1, %v725_v36, 0.0  ;;  %v831_v56 = vmul.f32 %v1927_v52, %v1788_v27 }
 0x1aa   : > { %v768_v20 = vsel %vm538_vm1, %v724_v38, 0.0  ;;  %v1930_v53 = vadd.s32 4294967288, %v1922_v50  ;;  %v830_v6 = vmul.f32 %v1927_v52, %v1794_v29 }
 0x1ab   : > { %739 = vadd.xlane.f32.xlu1 %v738_v58  ;;  %736 = vadd.xlane.f32.xlu2 %v735_v59  ;;  %v849_v59 = vsel %vm538_vm1, %v831_v56, 0.0 }
 0x1ac   : > { %v846_v16 = vsel %vm538_vm1, %v830_v6, 0.0  ;;  %v843_v6 = vmul.f32 %v1927_v52, %v1829_v51  ;;  %v844_v51 = vmul.f32 %v1927_v52, %v1876_v26 }
 0x1ad   : > { %745 = vadd.xlane.f32.xlu0 %v744_v60 }
 0x1b3   : > { %748 = vadd.xlane.f32.xlu1 %v747_v7  ;;  %742 = vadd.xlane.f32.xlu2 %v741_v9  ;;  %v834_v7 = vmul.f32 %v1927_v52, %v1797_v30 }
 0x1b5   : > { %754 = vadd.xlane.f32.xlu0 %v753_v11 }
 0x1bb   : > { %757 = vadd.xlane.f32.xlu1 %v756_v17  ;;  %751 = vadd.xlane.f32.xlu2 %v750_v18  ;;  %v858_v17 = vsel %vm538_vm1, %v834_v7, 0.0  ;;  %v845_v7 = vmul.f32 %v1927_v52, %v1863_v61 }
 0x1bd   : > { %763 = vadd.xlane.f32.xlu0 %v762_v24 }
 0x1c3   : > { %766 = vadd.xlane.f32.xlu1 %v765_v37  ;;  %760 = vadd.xlane.f32.xlu2 %v759_v57 }
 0x1c5   : > { %772 = vadd.xlane.f32.xlu0 %v771_v21 }
 0x1cb   : > { %769 = vadd.xlane.f32.xlu2 %v768_v20  ;;  %v833_v20 = vmul.f32 %v1927_v52, %v1779_v22 }
 0x1cd   : > { %850 = vadd.xlane.f32.xlu0 %v849_v59 }
 0x1d3   : > { %847 = vadd.xlane.f32.xlu2 %v846_v16 }
 0x1d5   : > { %859 = vadd.xlane.f32.xlu0 %v858_v17 }
 0x216   : > { %v731_v39 = vpop.xlane.xlu2 %730  ;;  %v728_v40 = vpop.xlane.xlu1 %727 }
 0x217   : > { %v794_v0 = vperm.slane %v731_v39, %v1930_v53  ;;  %v792_v60 = vperm.slane %v728_v40, %v1922_v50  ;;  %v836_v39 = vmul.f32 %v1927_v52, %v1805_v34 }
 0x218   : > { %v734_v42 = vpop.xlane.xlu0 %733 }
 0x219   : > { %v797_v3 = vperm.slane %v734_v42, %v1922_v50  ;;  %v796_v9 = vsel %vm795_vm13, %v794_v0, %v792_v60 }
 0x21e   : > { %v740_v43 = vpop.xlane.xlu1 %739  ;;  %v737_v44 = vpop.xlane.xlu2 %736 }
 0x21f   : > { %v798_v58 = vperm.slane %v737_v44, %v1930_v53  ;;  %v800_v4 = vperm.slane %v740_v43, %v1922_v50 }
 0x220   : > { %v746_v45 = vpop.xlane.xlu0 %745 }
 0x221   : > { %v799_v5 = vsel %vm795_vm13, %v798_v58, %v797_v3  ;;  %v803_v13 = vperm.slane %v746_v45, %v1922_v50 }
 0x222   : > { %v818_v29 = vsel %vm644_vm6, %v799_v5, %v796_v9  ;;  %v840_v5 = vmul.f32 %v1927_v52, %v1841_v63 }
 0x226   : > { %v749_v46 = vpop.xlane.xlu1 %748  ;;  %v743_v47 = vpop.xlane.xlu2 %742 }
 0x227   : > { %v801_v62 = vperm.slane %v743_v47, %v1930_v53  ;;  %v804_v27 = vperm.slane %v749_v46, %v1930_v53  ;;  %v855_v46 = vsel %vm538_vm1, %v833_v20, 0.0  ;;  %v864_v47 = vsel %vm538_vm1, %v836_v39, 0.0 }
 0x228   : > { %v755_v48 = vpop.xlane.xlu0 %754  ;;  %856 = vadd.xlane.f32.xlu2 %v855_v46  ;;  %865 = vadd.xlane.f32.xlu0 %v864_v47 }
 0x229   : > { %v802_v10 = vsel %vm795_vm13, %v801_v62, %v800_v4  ;;  %v807_v30 = vperm.slane %v755_v48, %v1930_v53  ;;  %v805_v18 = vsel %vm795_vm13, %v804_v27, %v803_v13  ;;  %v841_v62 = vmul.f32 %v1927_v52, %v1848_v8 }
 0x22a   : > { %v819_v24 = vsel %vm647_vm7, %v802_v10, %v818_v29  ;;  %v835_v4 = vmul.f32 %v1927_v52, %v1800_v31  ;;  %v876_v27 = vsel %vm538_vm1, %v840_v5, 0.0  ;;  %v885_v31 = vsel %vm538_vm1, %v843_v6, 0.0 }
 0x22b   : > { %v820_v37 = vsel %vm650_vm8, %v805_v18, %v819_v24  ;;  %v888_v13 = vsel %vm538_vm1, %v844_v51, 0.0 }
 0x22c   : > { %v861_v8 = vsel %vm538_vm1, %v835_v4, 0.0 }
 0x22e   : > { %v758_v54 = vpop.xlane.xlu1 %757  ;;  %v752_v55 = vpop.xlane.xlu2 %751 }
 0x22f   : > { %v806_v11 = vperm.slane %v752_v55, %v1922_v50  ;;  %v809_v25 = vperm.slane %v758_v54, %v1922_v50  ;;  %v838_v54 = vmul.f32 %v1927_v52, %v1808_v35  ;;  %v839_v55 = vmul.f32 %v1927_v52, %v1817_v41 }
 0x230   : > { %v764_v1 = vpop.xlane.xlu0 %763  ;;  %v842_v35 = vmul.f32 %v1927_v52, %v1826_v49  ;;  %v832_v41 = vmul.f32 %v1927_v52, %v1782_v23  ;;  %v837_v49 = vmul.f32 %v1927_v52, %v1791_v28  ;;  %v891_v28 = vsel %vm538_vm1, %v845_v7, 0.0 }
 0x231   : > { %v808_v32 = vsel %vm795_vm13, %v807_v30, %v806_v11  ;;  %v812_v57 = vperm.slane %v764_v1, %v1922_v50  ;;  %v870_v56 = vsel %vm538_vm1, %v838_v54, 0.0  ;;  %v873_v58 = vsel %vm538_vm1, %v839_v55, 0.0 }
 0x232   : > { %v821_v38 = vsel %vm653_vm9, %v808_v32, %v820_v37  ;;  %871 = vadd.xlane.f32.xlu2 %v870_v56  ;;  %874 = vadd.xlane.f32.xlu0 %v873_v58  ;;  %v879_v1 = vsel %vm538_vm1, %v841_v62, 0.0  ;;  %v882_v2 = vsel %vm538_vm1, %v842_v35, 0.0  ;;  %v852_v3 = vsel %vm538_vm1, %v832_v41, 0.0 }
 0x233   : > { %v867_v23 = vsel %vm538_vm1, %v837_v49, 0.0 }
 0x236   : > { %v761_v12 = vpop.xlane.xlu2 %760  ;;  %v767_v14 = vpop.xlane.xlu1 %766 }
 0x237   : > { %v810_v15 = vperm.slane %v761_v12, %v1930_v53  ;;  %v813_v33 = vperm.slane %v767_v14, %v1930_v53 }
 0x238   : > { %v773_v21 = vpop.xlane.xlu0 %772 }
 0x239   : > { %v811_v36 = vsel %vm795_vm13, %v810_v15, %v809_v25  ;;  %v814_v40 = vsel %vm795_vm13, %v813_v33, %v812_v57  ;;  %v816_v44 = vperm.slane %v773_v21, %v1930_v53  ;;  %v894_v25 = vstv %s381_s2 }
 0x23a   : > { %v822_v42 = vsel %vm656_vm10, %v811_v36, %v821_v38  ;;  %880 = vadd.xlane.f32.xlu2 %v879_v1  ;;  %883 = vadd.xlane.f32.xlu0 %v882_v2 }
 0x23b   : > { %v823_v22 = vsel %vm659_vm11, %v814_v40, %v822_v42 }
 0x23e   : > { %v770_v43 = vpop.xlane.xlu2 %769 }
 0x23f   : > { %v815_v45 = vperm.slane %v770_v43, %v1922_v50 }
 0x240   : > { %v851_v61 = vpop.xlane.xlu0 %850 }
 0x241   : > { %v817_v48 = vsel %vm795_vm13, %v816_v44, %v815_v45  ;;  %v896_v36 = vadd.f32 %v894_v25, %v851_v61 }
 0x242   : > { %v824_v34 = vsel %vm662_vm12, %v817_v48, %v823_v22  ;;  %892 = vadd.xlane.f32.xlu0 %v891_v28 }
 0x243   : > { %826 = vst.msk [vmem:[%s1979_s11] sm:$0xff] %vm382_vm0, %v824_v34  ;;  %v928_v20 = vperm.slane %v896_v36, %v1930_v53 }
 0x246   : > { %v848_v15 = vpop.xlane.xlu2 %847 }
 0x247   : > { %v895_v37 = vadd.f32 %v894_v25, %v848_v15 }
 0x248   : > { %v860_v16 = vpop.xlane.xlu0 %859 }
 0x249   : > { %v899_v21 = vadd.f32 %v894_v25, %v860_v16  ;;  %v927_v39 = vperm.slane %v895_v37, %v1922_v50 }
 0x24a   : > { %v961_v59 = vld [vmem:[%s1979_s11] sm:$0xff] }
 0x24b   : > { %v962_v0 = vsel %vm960_vm14, %v961_v59, -1e+30  ;;  %v933_v46 = vperm.slane %v899_v21, %v1922_v50  ;;  %v929_v48 = vsel %vm795_vm13, %v928_v20, %v927_v39 }
 0x24c   : > { %v963_v60 = vsel %vm382_vm0, %v962_v0, -inf }
 0x24d   : > { %964 = vmax.xlane.f32.xlu1 %v963_v60 }
 0x255   : > { %853 = vadd.xlane.f32.xlu1 %v852_v3 }
 0x25d   : > { %862 = vadd.xlane.f32.xlu1 %v861_v8 }
 0x265   : > { %868 = vadd.xlane.f32.xlu1 %v867_v23 }
 0x26d   : > { %877 = vadd.xlane.f32.xlu1 %v876_v27 }
 0x275   : > { %886 = vadd.xlane.f32.xlu1 %v885_v31 }
 0x29b   : > { %v857_v29 = vpop.xlane.xlu2 %856  ;;  %v866_v30 = vpop.xlane.xlu0 %865 }
 0x29c   : > { %v898_v57 = vadd.f32 %v894_v25, %v857_v29  ;;  %v901_v44 = vadd.f32 %v894_v25, %v866_v30 }
 0x29e   : > { %v931_v40 = vperm.slane %v898_v57, %v1930_v53  ;;  %v936_v56 = vperm.slane %v901_v44, %v1922_v50 }
 0x2a5   : > { %v872_v24 = vpop.xlane.xlu2 %871  ;;  %v875_v32 = vpop.xlane.xlu0 %874 }
 0x2a6   : > { %v903_v34 = vadd.f32 %v894_v25, %v872_v24  ;;  %v904_v54 = vadd.f32 %v894_v25, %v875_v32 }
 0x2a8   : > { %v939_v35 = vperm.slane %v903_v34, %v1922_v50  ;;  %v940_v41 = vperm.slane %v904_v54, %v1930_v53 }
 0x2aa   : > { %v941_v6 = vsel %vm795_vm13, %v940_v41, %v939_v35 }
 0x2ad   : > { %v881_v42 = vpop.xlane.xlu2 %880  ;;  %v884_v47 = vpop.xlane.xlu0 %883 }
 0x2ae   : > { %v906_v60 = vadd.f32 %v894_v25, %v881_v42  ;;  %v907_v8 = vadd.f32 %v894_v25, %v884_v47 }
 0x2b0   : > { %v943_v5 = vperm.slane %v906_v60, %v1930_v53  ;;  %v945_v28 = vperm.slane %v907_v8, %v1922_v50 }
 0x2b5   : > { %v893_v49 = vpop.xlane.xlu0 %892 }
 0x2b6   : > { %v910_v31 = vadd.f32 %v894_v25, %v893_v49 }
 0x2b8   : > { %v949_v61 = vperm.slane %v910_v31, %v1930_v53 }
 0x2c0   : > { %v965_v9 = vpop.xlane.xlu1 %964 }
 0x2c1   : > { %v966_v10 = vsub.f32 %v962_v0, %v965_v9 }
 0x2c3   : > { %v967_v11 = vmul.f32 1.442695, %v966_v10 }
 0x2c5   : > { %1334 = vpow2.f32 %v967_v11 }
 0x2c8   : > { %v854_v14 = vpop.xlane.xlu1 %853 }
 0x2c9   : > { %v897_v33 = vadd.f32 %v894_v25, %v854_v14 }
 0x2cb   : > { %v2016_v63 = vpop.eup %1334  ;;  %v930_v38 = vperm.slane %v897_v33, %v1922_v50 }
 0x2cc   : > { %v969_v12 = vsel %vm382_vm0, %v2016_v63, 0.0 }
 0x2cd   : > { %970 = vadd.xlane.f32.xlu2 %v969_v12  ;;  %v932_v22 = vsel %vm795_vm13, %v931_v40, %v930_v38 }
 0x2ce   : > { %v951_v59 = vsel %vm644_vm6, %v932_v22, %v929_v48 }
 0x2d0   : > { %v863_v17 = vpop.xlane.xlu1 %862 }
 0x2d1   : > { %v900_v52 = vadd.f32 %v894_v25, %v863_v17 }
 0x2d3   : > { %v934_v45 = vperm.slane %v900_v52, %v1930_v53 }
 0x2d5   : > { %889 = vadd.xlane.f32.xlu2 %v888_v13  ;;  %v935_v58 = vsel %vm795_vm13, %v934_v45, %v933_v46 }
 0x2d6   : > { %v952_v2 = vsel %vm647_vm7, %v935_v58, %v951_v59 }
 0x2d8   : > { %v869_v18 = vpop.xlane.xlu1 %868 }
 0x2d9   : > { %v902_v43 = vadd.f32 %v894_v25, %v869_v18 }
 0x2db   : > { %v937_v55 = vperm.slane %v902_v43, %v1930_v53 }
 0x2dd   : > { %v938_v3 = vsel %vm795_vm13, %v937_v55, %v936_v56 }
 0x2de   : > { %v953_v27 = vsel %vm650_vm8, %v938_v3, %v952_v2 }
 0x2df   : > { %v954_v10 = vsel %vm653_vm9, %v941_v6, %v953_v27 }
 0x2e0   : > { %v878_v26 = vpop.xlane.xlu1 %877 }
 0x2e1   : > { %v905_v0 = vadd.f32 %v894_v25, %v878_v26 }
 0x2e3   : > { %v942_v23 = vperm.slane %v905_v0, %v1922_v50 }
 0x2e5   : > { %v944_v11 = vsel %vm795_vm13, %v943_v5, %v942_v23 }
 0x2e6   : > { %v955_v14 = vsel %vm656_vm10, %v944_v11, %v954_v10 }
 0x2e8   : > { %v887_v62 = vpop.xlane.xlu1 %886 }
 0x2e9   : > { %v908_v4 = vadd.f32 %v894_v25, %v887_v62 }
 0x2eb   : > { %v946_v7 = vperm.slane %v908_v4, %v1930_v53 }
 0x2ed   : > { %v947_v15 = vsel %vm795_vm13, %v946_v7, %v945_v28 }
 0x2ee   : > { %v956_v24 = vsel %vm659_vm11, %v947_v15, %v955_v14 }
 0x340   : > { %v971_v1 = vpop.xlane.xlu2 %970 }
 0x341   : > { %1336 = vrcp.f32 %v971_v1  ;;  %v983_v17 = vand.u32 2147483648, %v971_v1  ;;  %v981_v18 = vand.u32 2147483647, %v971_v1  ;;  %vm977_vm1 = vweird.f32 %v971_v1 }
 0x343   : > { %v984_v33 = vor.u32 1.1754944e-38, %v983_v17  ;;  %vm982_vm3 = vcmp.eq.f32.partialorder %v981_v18, 8.507059e+37 }
 0x347   : > { %v1337_v9 = vpop.eup %1336 }
 0x348   : > { %v973_v12 = vmul.f32 %v1337_v9, %v971_v1  ;;  %v890_v51 = vpop.xlane.xlu2 %889  ;;  %vm978_vm15 = vweird.f32 %v1337_v9 }
 0x349   : > { %v909_v13 = vadd.f32 %v894_v25, %v890_v51  ;;  %vm979_vm2 = vmor %vm977_vm1, %vm978_vm15 }
 0x34a   : > { %v974_v16 = vsub.f32 1.0, %v973_v12 }
 0x34b   : > { %v948_v29 = vperm.slane %v909_v13, %v1922_v50 }
 0x34c   : > { %v975_v30 = vmul.f32 %v1337_v9, %v974_v16 }
 0x34d   : > { %v950_v25 = vsel %vm795_vm13, %v949_v61, %v948_v29 }
 0x34e   : > { %v957_v53 = vsel %vm662_vm12, %v950_v25, %v956_v24  ;;  %v976_v32 = vadd.f32 %v1337_v9, %v975_v30 }
 0x34f   : > { %959 = vst.msk [vmem:[%s366_s21] sm:$0xff] %vm382_vm0, %v957_v53 }
 0x350   : > { %v980_v50 = vsel %vm979_vm2, %v1337_v9, %v976_v32 }
 0x351   : > { %v985_v36 = vsel %vm982_vm3, %v984_v33, %v980_v50 }
 0x352   : > { %v987_v37 = vmul.f32 %v2016_v63, %v985_v36 }
 0x354   : > { %988 = vst.msk [vmem:[%s1979_s11] sm:$0xff] %vm382_vm0, %v987_v37 }
 0x356   : > { %v989_v57 = vld [vmem:[%s366_s21] sm:$0xff] }
 0x357   : > { %1455 = shalt.err (!%p1452_p9)
}
 0x358   : > { %1256 = dma.vmem_to_hbm [thread:$0]  (%p1683_p7), %s1038_s16, 128, %s1040_s17, %s2068_s19   ;;  %v990_v63 = vmul.f32 %v989_v57, %v987_v37 }
 0x359   : > { %s1021_s2 = scalar_lea.hbm %s2140_s5, %s2058_s10  ;;  %s1023_s21 = sshll.u32 %s1979_s11, 4  ;;  %s1024_s21 = int_to_ptr.vmem [resolvable:$true] %s1023_s21 }
 0x35a   : > { %s1025_s12 = sshll.u32 %s1021_s2, 4  ;;  %v991_v26 = vsel %vm382_vm0, %v990_v63, 0.0  ;;  %s1001_s18 = scalar_lea.sflag [#allocation5], %s1738_s28  ;;  %s1026_s12 = int_to_ptr.hbm [resolvable:$true] %s1025_s12 }
 0x35b   : > { %992 = vadd.xlane.f32.xlu1 %v991_v26  ;;  %s1470_s14 = sshra.s32 %s1026_s12, 4  ;;  %s1476_s9 = scalar_lea.hbm %s2140_s5, 16  ;;  %s1471_s14 = int_to_ptr.hbm [resolvable:$true] %s1470_s14 }
 0x35c   : > { %s1472_s30 = scalar_lea.hbm %s1471_s14, 8  ;;  %p1477_p3 = scmp.lt.s32.totalorder %s1471_s14, %s2140_s5 }
 0x35d   : > { %p1473_p12 = scmp.ne.s32.totalorder %s1471_s14, %s1472_s30  ;;  %p1478_p5 = scmp.lt.s32.totalorder %s1476_s9, %s1472_s30 }
 0x35f   : > { %p1474_p13 = pnand %p1473_p12, %p1683_p7  ;;  %p1479_p1 = por %p1478_p5, %p1477_p3 }
 0x361   : > { %p1475_p0 = pneg %p1474_p13 }
 0x363   : > { %p1480_p4 = pnand %p1479_p1, %p1475_p0 }
 0x365   : > { %1483 = shalt.err (!%p1480_p4)
}
 0x366   : > { %1255 = dma.vmem_to_hbm [thread:$0]  (%p1683_p7), %s1024_s21, 128, %s1026_s12, %s1001_s18   ;;  %vm994_vm4 = vcmp.gt.f32.partialorder %v1776_v19, 0.0  ;;  %vm1567_vm5 = vmmov 1  }
 0x367   : > { %s1049_s24 = scalar_lea.hbm %s2142_s7, %s2058_s10  ;;  %s373_s8 = scalar_lea.vmem [#allocation12], %s1750_s20 }
 0x368   : > { %s1051_s25 = sshll.u32 %s373_s8, 4  ;;  %s1053_s4 = sshll.u32 %s1049_s24, 4  ;;  %s1052_s25 = int_to_ptr.vmem [resolvable:$true] %s1051_s25  ;;  %s1054_s4 = int_to_ptr.hbm [resolvable:$true] %s1053_s4 }
 0x369   : > { %s1498_s13 = sshra.s32 %s1054_s4, 4  ;;  %s1504_s21 = scalar_lea.hbm %s2142_s7, 16  ;;  %s1499_s13 = int_to_ptr.hbm [resolvable:$true] %s1498_s13 }
 0x36a   : > { %s1500_s2 = scalar_lea.hbm %s1499_s13, 8  ;;  %p1505_p11 = scmp.lt.s32.totalorder %s1499_s13, %s2142_s7 }
 0x36b   : > { %p1501_p8 = scmp.ne.s32.totalorder %s1499_s13, %s1500_s2  ;;  %p1506_p9 = scmp.lt.s32.totalorder %s1504_s21, %s1500_s2 }
 0x36d   : > { %p1502_p2 = pnand %p1501_p8, %p1683_p7  ;;  %p1507_p12 = por %p1506_p9, %p1505_p11 }
 0x36f   : > { %p1503_p10 = pneg %p1502_p2 }
 0x371   : > { %p1508_p13 = pnand %p1507_p12, %p1503_p10 }
 0x3ce   : > { %v993_v52 = vpop.xlane.xlu1 %992 }
 0x3cf   : > { %vm995_vm0 = vcmp.ne.f32.partialorder %v993_v52, %v993_v52 }
 0x3d0   : > { %vm996_vm6 = vmxor %vm995_vm0, %vm1567_vm5 }
 0x3d1   : > { %vm997_vm7 = vmand %vm994_vm4, %vm996_vm6 }
 0x3d2   : > { %v998_v21 = vsel %vm997_vm7, %v993_v52, 0.0 }
 0x3d3   : > { %999 = vst [vmem:[%s373_s8] sm:$0xff] %v998_v21 }
 0x3d4   : > { %1511 = shalt.err (!%p1508_p13)
}
 0x3d5   : > { %1257 = dma.vmem_to_hbm [thread:$0]  (%p1683_p7), %s1052_s25, 128, %s1054_s4, %s2068_s19  }
 0x3d6 PF: > { %s1065_s30 = sand.u32 1, %s1550_s26   ;;  %p2166_p0 = scmp.ge.s32.totalorder %s1562_s29, 2 }
 0x3d7   : > { %s1066_s16 = scalar_lea.sflag [#allocation5], %s1065_s30 }
 0x3d8   : > { %p1273_p3 = pnand %p2166_p0, %p1648_p6 }
 0x3da   : > { %p1274_p5 = pneg %p1273_p3 }
 0x3dc   : > { %1541 = dma.done.wait (%p1274_p5), %s1066_s16, 128  }
 0x3dd   : > { %1543 = vsyncadd (%p1274_p5), %s1066_s16, 4294967168  ;;  %s2167_s17 = sadd.s32 4294967294, %s1562_s29  }
 0x3de   : > { %s1075_s9 = sand.u32 1, %s2167_s17  }
 0x3df   : > { %s1076_s23 = scalar_lea.sflag [#allocation11], %s1075_s9 }
 0x3e0   : > { %1545 = dma.done.wait (%p1274_p5), %s1076_s23, 256  }
 0x3e1   : > { %1547 = vsyncadd (%p1274_p5), %s1076_s23, 4294967040  ;;  %s2168_s29 = sld [smem:[#allocation20_spill]]  ;;  %s2171_s26 = smov %s1554_s27 }
 0x3e2   : > { %s2169_s22 = sld [smem:[#allocation18_spill]] }
 0x3e3   : > { %s2170_s28 = sld [smem:[#allocation21_spill]] }
 0x3e7   : > { %p28_p7 = scmp.ge.s32.totalorder %s2168_s29, 4  }
 0x3e8   : > { %s2172_s27 = smov %s2169_s22 }
 0x3e9   :  { %30 = sbr.rel (!%p28_p7) target bundleno = 12 (0xc), region = 134 }
 0x3ee   :  { %1092 = vsyncpa [#allocation4], 1 }
 0x3ef   :  { %1094 = vsyncpa [#allocation4 + $0x1], 1 }
 0x3f0   :  { %1095 = vsyncpa [#allocation7], 1 }
 0x3f1   :  { %1097 = vsyncpa [#allocation7 + $0x1], 1 }
 0x3f2   :  { %1098 = vsyncpa [#allocation5], 1 }
 0x3f3   :  { %1100 = vsyncpa [#allocation5 + $0x1], 1 }
 0x3f4   :  { %1101 = vsyncpa [#allocation11], 1 }
 0x3f5   :  { %1103 = vsyncpa [#allocation11 + $0x1], 1 }

</bundles_post_ra>
